<compile_context>
chip_gen: v7x
topology: tpu7x:2x2x1
jax: 0.10.0
libtpu: 0.0.40
codegen_flags: <defaults>
</compile_context>

<pallas_src>
import jax
import jax.numpy as jnp
from jax.experimental import pallas as pl
from jax.experimental.pallas import tpu as pltpu


def _round_up(x, m):
    return (x + m - 1) // m * m


def _mlp_softmax_kernel(*refs):
    """refs = (x_ref, w0, b0, w1, b1, ..., wK, bK, out_ref)."""
    x_ref = refs[0]
    out_ref = refs[-1]
    wb_refs = refs[1:-1]
    n_layers = len(wb_refs) // 2

    h = x_ref[...].astype(jnp.bfloat16)                # (tm, N_pad) bf16
    for li in range(n_layers):
        w = wb_refs[2 * li][...]                       # (in_pad, out_pad) bf16
        b = wb_refs[2 * li + 1][...]                   # (1, out_pad) f32
        acc = jnp.dot(h, w, preferred_element_type=jnp.float32) + b
        # keep the final logits in f32 for the softmax; intermediates go back to bf16
        h = acc if li == n_layers - 1 else acc.astype(jnp.bfloat16)

    # Padded class lanes already carry -1e30 via the final bias padding, so no mask is
    # needed here; they contribute exp(-huge) == 0 to the denominator.
    m = jnp.max(h, axis=-1, keepdims=True)
    e = jnp.exp(h - m)
    s = jnp.sum(e, axis=-1, keepdims=True)
    out_ref[...] = (e * pl.reciprocal(s, approx=True)).astype(out_ref.dtype)


def softmax_classify_forward(x, weights, biases, *, tm=512, out_dtype=jnp.bfloat16):
    """x: (B, L, N) f32.  weights[i]: (in_i, out_i) f32, biases[i]: (out_i,) f32."""
    B, L, N = x.shape
    M = B * L
    num_class = weights[-1].shape[1]
    num_layers = len(weights)

    # ----- lane-dense padded dims -----
    n_pad = _round_up(N, 128)
    out_dims_pad = [_round_up(w.shape[1], 128) for w in weights]
    in_dims_pad = [n_pad] + out_dims_pad[:-1]
    c_pad = out_dims_pad[-1]

    # ----- row tile (multiple of 16 for bf16 packing); >= 2 grid steps when possible
    # so a v7x megacore shards the row axis across both TensorCores -----
    tm_eff = max(16, min(_round_up(tm, 16), _round_up(M, 16)))
    if _round_up(M, tm_eff) // tm_eff < 2 and M > 16:
        tm_eff = max(16, _round_up(pl.cdiv(M, 2), 16))
    m_pad = _round_up(M, tm_eff)

    # ----- input: avoid the pad/cast pre-pass when x is already tile-aligned -----
    x_flat = x.reshape(M, N)
    if m_pad == M and n_pad == N:
        x_in = x_flat                                   # cast to bf16 inside the kernel
    else:
        x_in = jnp.zeros((m_pad, n_pad), jnp.bfloat16).at[:M, :N].set(
            x_flat.astype(jnp.bfloat16))

    # ----- pad weights / biases (padded-class mask baked into the final bias) -----
    wb_args, wb_shapes = [], []
    for li, (w, b, din_p, dout_p) in enumerate(
            zip(weights, biases, in_dims_pad, out_dims_pad)):
        w_p = jnp.zeros((din_p, dout_p), jnp.bfloat16)
        w_p = w_p.at[: w.shape[0], : w.shape[1]].set(w.astype(jnp.bfloat16))
        if li == num_layers - 1 and num_class < dout_p:
            b_p = jnp.full((1, dout_p), -1e30, jnp.float32)   # mask padded class lanes
        else:
            b_p = jnp.zeros((1, dout_p), jnp.float32)
        b_p = b_p.at[0, : b.shape[0]].set(b.astype(jnp.float32))
        wb_args.extend([w_p, b_p])
        wb_shapes.extend([(din_p, dout_p), (1, dout_p)])

    # TODO(synk): for very large hidden sizes (resident bf16 weights > ~40 MiB on v7x),
    # stream weights layer-by-layer (emit_pipeline / K-tiled first matmul) instead of
    # keeping every layer resident in VMEM.

    out_itemsize = jnp.dtype(out_dtype).itemsize

    def _vmem_limit(single_buffer_weights):
        wb_mult = 1 if single_buffer_weights else 2
        need = 2 * tm_eff * n_pad * x_in.dtype.itemsize        # input tile (dbl-buffered)
        need += 2 * tm_eff * c_pad * out_itemsize              # output tile (dbl-buffered)
        for a in wb_args:
            need += wb_mult * a.size * a.dtype.itemsize        # resident weights/biases
        for dout_p in out_dims_pad:                            # fused f32 acc + bf16 act
            need += tm_eff * dout_p * (4 + 2)
        cap = 48 << 20                                         # safe on v7x (64 MiB/TC)
        try:
            cap = int(pltpu.get_tpu_info().vmem_capacity_bytes * 3 // 4)
        except Exception:
            pass
        return int(min(max(need * 5 // 4 + (4 << 20), 32 << 20), cap))

    def _wb_specs(single_buffer_weights):
        specs = []
        for shp in wb_shapes:
            if single_buffer_weights:
                # constant index_map -> weights never change; no double buffering needed
                specs.append(pl.BlockSpec(shp, lambda i: (0, 0),
                                          pipeline_mode=pl.Buffered(1)))
            else:
                specs.append(pl.BlockSpec(shp, lambda i: (0, 0)))
        return specs

    def _run(single_buffer_weights):
        grid_spec = pl.GridSpec(
            grid=(m_pad // tm_eff,),
            in_specs=[pl.BlockSpec((tm_eff, n_pad), lambda i: (i, 0))]
                     + _wb_specs(single_buffer_weights),
            out_specs=pl.BlockSpec((tm_eff, c_pad), lambda i: (i, 0)),
        )
        return pl.pallas_call(
            _mlp_softmax_kernel,
            out_shape=jax.ShapeDtypeStruct((m_pad, c_pad), out_dtype),
            grid_spec=grid_spec,
            compiler_params=pltpu.CompilerParams(
                dimension_semantics=("parallel",),
                vmem_limit_bytes=_vmem_limit(single_buffer_weights),
            ),
        )(x_in, *wb_args)

    try:
        out = _run(single_buffer_weights=True)
    except Exception:
        # Fallback for toolchains where pipeline_mode=pl.Buffered(1) is unsupported.
        out = _run(single_buffer_weights=False)

    # trim row padding and padded class lanes
    return out[:M, :num_class].reshape(B, L, num_class)


def init_params(key, hidden_size, num_linear, num_class):
    """Matches the PyTorch module's layer shapes; weights stored as (in, out)."""
    dims = []
    tmp = hidden_size
    for _ in range(num_linear - 1):
        dims.append((int(tmp), int(tmp // 2)))
        tmp //= 2
    dims.append((int(tmp), num_class))

    weights, biases = [], []
    for din, dout in dims:
        key, kw, kb = jax.random.split(key, 3)
        bound = 1.0 / jnp.sqrt(din)
        weights.append(jax.random.uniform(kw, (din, dout), jnp.float32, -bound, bound))
        biases.append(jax.random.uniform(kb, (dout,), jnp.float32, -bound, bound))
    return weights, biases


if __name__ == "__main__":
    key = jax.random.PRNGKey(0)

    B, L = 2, 8
    hidden_size = 32
    num_linear = 3          # layers: 32->16, 16->8, 8->num_class
    num_class = 4

    key, kx = jax.random.split(key)
    x = jax.random.normal(kx, (B, L, hidden_size), jnp.float32)

    weights, biases = init_params(key, hidden_size, num_linear, num_class)

    out = softmax_classify_forward(x, weights, biases)
    out = jax.block_until_ready(out)
    out_f32 = out.astype(jnp.float32)

    # plain-JAX f32 reference (kernel uses bf16 matmuls, bf16 output, and approx
    # reciprocal; tolerances reflect that, not a bug)
    h = x.reshape(B * L, hidden_size)
    for w, b in zip(weights, biases):
        h = h @ w + b
    ref = jax.nn.softmax(h, axis=-1).reshape(B, L, num_class)

    assert out.shape == (B, L, num_class)
    assert jnp.allclose(out_f32, ref, atol=2e-2, rtol=2e-2)
    assert jnp.allclose(jnp.sum(out_f32, axis=-1), 1.0, atol=1e-2)

    print("KERNEL_OK")
</pallas_src>

<mosaic_0001>
module attributes {stable_mosaic.version = 11 : i64} {
  func.func @_mlp_softmax_kernel(%arg0: i32, %arg1: memref<16x128xbf16, #tpu.memory_space<vmem>>, %arg2: memref<128x128xbf16, #tpu.memory_space<vmem>>, %arg3: memref<1x128xf32, #tpu.memory_space<vmem>>, %arg4: memref<128x128xbf16, #tpu.memory_space<vmem>>, %arg5: memref<1x128xf32, #tpu.memory_space<vmem>>, %arg6: memref<128x128xbf16, #tpu.memory_space<vmem>>, %arg7: memref<1x128xf32, #tpu.memory_space<vmem>>, %arg8: memref<16x128xbf16, #tpu.memory_space<vmem>>) attributes {dimension_semantics = [#tpu.dimension_semantics<parallel>], iteration_bounds = array<i64: 1>, scalar_prefetch = 0 : i64, scratch_operands = 0 : i64, tpu.core_type = #tpu.core_type<tc>, window_params = [{transform_indices = @transform_0, window_bounds = array<i64: 16, 128>}, {pipeline_mode = #tpu.pipeline_mode<synchronous>, transform_indices = @transform_1, window_bounds = array<i64: 128, 128>}, {pipeline_mode = #tpu.pipeline_mode<synchronous>, transform_indices = @transform_2, window_bounds = array<i64: 1, 128>}, {pipeline_mode = #tpu.pipeline_mode<synchronous>, transform_indices = @transform_3, window_bounds = array<i64: 128, 128>}, {pipeline_mode = #tpu.pipeline_mode<synchronous>, transform_indices = @transform_4, window_bounds = array<i64: 1, 128>}, {pipeline_mode = #tpu.pipeline_mode<synchronous>, transform_indices = @transform_5, window_bounds = array<i64: 128, 128>}, {pipeline_mode = #tpu.pipeline_mode<synchronous>, transform_indices = @transform_6, window_bounds = array<i64: 1, 128>}, {transform_indices = @transform_7, window_bounds = array<i64: 16, 128>}]} {
    %c0 = arith.constant 0 : index
    %c0_0 = arith.constant 0 : index
    %0 = vector.load %arg1[%c0, %c0_0] : memref<16x128xbf16, #tpu.memory_space<vmem>>, vector<16x128xbf16>
    %c0_1 = arith.constant 0 : index
    %c0_2 = arith.constant 0 : index
    %1 = vector.load %arg2[%c0_1, %c0_2] : memref<128x128xbf16, #tpu.memory_space<vmem>>, vector<128x128xbf16>
    %c0_3 = arith.constant 0 : index
    %c0_4 = arith.constant 0 : index
    %2 = vector.load %arg3[%c0_3, %c0_4] : memref<1x128xf32, #tpu.memory_space<vmem>>, vector<1x128xf32>
    %cst = arith.constant dense<0.000000e+00> : vector<16x128xf32>
    %3 = tpu.matmul %0, %1, %cst {dimension_numbers = #tpu.dot_dimension_numbers<[1], [0], [0], [1], [0, 0, 1, 1], [], []>} : vector<16x128xbf16>, vector<128x128xbf16>, vector<16x128xf32> -> vector<16x128xf32>
    %4 = vector.broadcast %2 : vector<1x128xf32> to vector<16x128xf32>
    %5 = arith.addf %3, %4 : vector<16x128xf32>
    %6 = arith.truncf %5 : vector<16x128xf32> to vector<16x128xbf16>
    %c0_5 = arith.constant 0 : index
    %c0_6 = arith.constant 0 : index
    %7 = vector.load %arg4[%c0_5, %c0_6] : memref<128x128xbf16, #tpu.memory_space<vmem>>, vector<128x128xbf16>
    %c0_7 = arith.constant 0 : index
    %c0_8 = arith.constant 0 : index
    %8 = vector.load %arg5[%c0_7, %c0_8] : memref<1x128xf32, #tpu.memory_space<vmem>>, vector<1x128xf32>
    %cst_9 = arith.constant dense<0.000000e+00> : vector<16x128xf32>
    %9 = tpu.matmul %6, %7, %cst_9 {dimension_numbers = #tpu.dot_dimension_numbers<[1], [0], [0], [1], [0, 0, 1, 1], [], []>} : vector<16x128xbf16>, vector<128x128xbf16>, vector<16x128xf32> -> vector<16x128xf32>
    %10 = vector.broadcast %8 : vector<1x128xf32> to vector<16x128xf32>
    %11 = arith.addf %9, %10 : vector<16x128xf32>
    %12 = arith.truncf %11 : vector<16x128xf32> to vector<16x128xbf16>
    %c0_10 = arith.constant 0 : index
    %c0_11 = arith.constant 0 : index
    %13 = vector.load %arg6[%c0_10, %c0_11] : memref<128x128xbf16, #tpu.memory_space<vmem>>, vector<128x128xbf16>
    %c0_12 = arith.constant 0 : index
    %c0_13 = arith.constant 0 : index
    %14 = vector.load %arg7[%c0_12, %c0_13] : memref<1x128xf32, #tpu.memory_space<vmem>>, vector<1x128xf32>
    %cst_14 = arith.constant dense<0.000000e+00> : vector<16x128xf32>
    %15 = tpu.matmul %12, %13, %cst_14 {dimension_numbers = #tpu.dot_dimension_numbers<[1], [0], [0], [1], [0, 0, 1, 1], [], []>} : vector<16x128xbf16>, vector<128x128xbf16>, vector<16x128xf32> -> vector<16x128xf32>
    %16 = vector.broadcast %14 : vector<1x128xf32> to vector<16x128xf32>
    %17 = arith.addf %15, %16 : vector<16x128xf32>
    %cst_15 = arith.constant dense<0xFF800000> : vector<16xf32>
    %18 = vector.multi_reduction <maximumf>, %17, %cst_15 [1] : vector<16x128xf32> to vector<16xf32>
    %19 = vector.shape_cast %18 : vector<16xf32> to vector<16x1xf32>
    %20 = vector.broadcast %19 : vector<16x1xf32> to vector<16x128xf32>
    %21 = arith.subf %17, %20 : vector<16x128xf32>
    %22 = math.exp %21 : vector<16x128xf32>
    %cst_16 = arith.constant dense<0.000000e+00> : vector<16xf32>
    %23 = vector.multi_reduction <add>, %22, %cst_16 [1] : vector<16x128xf32> to vector<16xf32>
    %24 = vector.shape_cast %23 : vector<16xf32> to vector<16x1xf32>
    %25 = tpu.reciprocal %24 {approx = true} : vector<16x1xf32> -> vector<16x1xf32>
    %26 = vector.broadcast %25 : vector<16x1xf32> to vector<16x128xf32>
    %27 = arith.mulf %22, %26 : vector<16x128xf32>
    %28 = arith.truncf %27 : vector<16x128xf32> to vector<16x128xbf16>
    %c0_17 = arith.constant 0 : index
    %c0_18 = arith.constant 0 : index
    %29 = vector.load %arg8[%c0_17, %c0_18] : memref<16x128xbf16, #tpu.memory_space<vmem>>, vector<16x128xbf16>
    tpu.vector_store %arg8[%c0_17, %c0_18], %28 {strides = array<i32>} : memref<16x128xbf16, #tpu.memory_space<vmem>>, vector<16x128xbf16>,
    return
  }
  func.func @transform_0(%arg0: i32) -> (i32, i32) {
    %c0_i32 = arith.constant 0 : i32
    %c0_i32_0 = arith.constant 0 : i32
    return %arg0, %c0_i32 : i32, i32
  }
  func.func @transform_1(%arg0: i32) -> (i32, i32) {
    %c0_i32 = arith.constant 0 : i32
    %c0_i32_0 = arith.constant 0 : i32
    %c0_i32_1 = arith.constant 0 : i32
    return %c0_i32, %c0_i32_0 : i32, i32
  }
  func.func @transform_2(%arg0: i32) -> (i32, i32) {
    %c0_i32 = arith.constant 0 : i32
    %c0_i32_0 = arith.constant 0 : i32
    %c0_i32_1 = arith.constant 0 : i32
    return %c0_i32, %c0_i32_0 : i32, i32
  }
  func.func @transform_3(%arg0: i32) -> (i32, i32) {
    %c0_i32 = arith.constant 0 : i32
    %c0_i32_0 = arith.constant 0 : i32
    %c0_i32_1 = arith.constant 0 : i32
    return %c0_i32, %c0_i32_0 : i32, i32
  }
  func.func @transform_4(%arg0: i32) -> (i32, i32) {
    %c0_i32 = arith.constant 0 : i32
    %c0_i32_0 = arith.constant 0 : i32
    %c0_i32_1 = arith.constant 0 : i32
    return %c0_i32, %c0_i32_0 : i32, i32
  }
  func.func @transform_5(%arg0: i32) -> (i32, i32) {
    %c0_i32 = arith.constant 0 : i32
    %c0_i32_0 = arith.constant 0 : i32
    %c0_i32_1 = arith.constant 0 : i32
    return %c0_i32, %c0_i32_0 : i32, i32
  }
  func.func @transform_6(%arg0: i32) -> (i32, i32) {
    %c0_i32 = arith.constant 0 : i32
    %c0_i32_0 = arith.constant 0 : i32
    %c0_i32_1 = arith.constant 0 : i32
    return %c0_i32, %c0_i32_0 : i32, i32
  }
  func.func @transform_7(%arg0: i32) -> (i32, i32) {
    %c0_i32 = arith.constant 0 : i32
    %c0_i32_0 = arith.constant 0 : i32
    return %arg0, %c0_i32 : i32, i32
  }
}

module attributes {stable_mosaic.version = 11 : i64} {
  func.func @_mlp_softmax_kernel(%arg0: i32, %arg1: memref<16x128xbf16, #tpu.memory_space<vmem>>, %arg2: memref<128x128xbf16, #tpu.memory_space<vmem>>, %arg3: memref<1x128xf32, #tpu.memory_space<vmem>>, %arg4: memref<128x128xbf16, #tpu.memory_space<vmem>>, %arg5: memref<1x128xf32, #tpu.memory_space<vmem>>, %arg6: memref<128x128xbf16, #tpu.memory_space<vmem>>, %arg7: memref<1x128xf32, #tpu.memory_space<vmem>>, %arg8: memref<16x128xbf16, #tpu.memory_space<vmem>>) attributes {dimension_semantics = [#tpu.dimension_semantics<parallel>], iteration_bounds = array<i64: 1>, scalar_prefetch = 0 : i64, scratch_operands = 0 : i64, tpu.core_type = #tpu.core_type<tc>, window_params = [{transform_indices = @transform_0, window_bounds = array<i64: 16, 128>}, {pipeline_mode = #tpu.pipeline_mode<synchronous>, transform_indices = @transform_1, window_bounds = array<i64: 128, 128>}, {pipeline_mode = #tpu.pipeline_mode<synchronous>, transform_indices = @transform_2, window_bounds = array<i64: 1, 128>}, {pipeline_mode = #tpu.pipeline_mode<synchronous>, transform_indices = @transform_3, window_bounds = array<i64: 128, 128>}, {pipeline_mode = #tpu.pipeline_mode<synchronous>, transform_indices = @transform_4, window_bounds = array<i64: 1, 128>}, {pipeline_mode = #tpu.pipeline_mode<synchronous>, transform_indices = @transform_5, window_bounds = array<i64: 128, 128>}, {pipeline_mode = #tpu.pipeline_mode<synchronous>, transform_indices = @transform_6, window_bounds = array<i64: 1, 128>}, {transform_indices = @transform_7, window_bounds = array<i64: 16, 128>}]} {
    %c0 = arith.constant 0 : index
    %c0_0 = arith.constant 0 : index
    %0 = vector.load %arg1[%c0, %c0_0] : memref<16x128xbf16, #tpu.memory_space<vmem>>, vector<16x128xbf16>
    %c0_1 = arith.constant 0 : index
    %c0_2 = arith.constant 0 : index
    %1 = vector.load %arg2[%c0_1, %c0_2] : memref<128x128xbf16, #tpu.memory_space<vmem>>, vector<128x128xbf16>
    %c0_3 = arith.constant 0 : index
    %c0_4 = arith.constant 0 : index
    %2 = vector.load %arg3[%c0_3, %c0_4] : memref<1x128xf32, #tpu.memory_space<vmem>>, vector<1x128xf32>
    %cst = arith.constant dense<0.000000e+00> : vector<16x128xf32>
    %3 = tpu.matmul %0, %1, %cst {dimension_numbers = #tpu.dot_dimension_numbers<[1], [0], [0], [1], [0, 0, 1, 1], [], []>} : vector<16x128xbf16>, vector<128x128xbf16>, vector<16x128xf32> -> vector<16x128xf32>
    %4 = vector.broadcast %2 : vector<1x128xf32> to vector<16x128xf32>
    %5 = arith.addf %3, %4 : vector<16x128xf32>
    %6 = arith.truncf %5 : vector<16x128xf32> to vector<16x128xbf16>
    %c0_5 = arith.constant 0 : index
    %c0_6 = arith.constant 0 : index
    %7 = vector.load %arg4[%c0_5, %c0_6] : memref<128x128xbf16, #tpu.memory_space<vmem>>, vector<128x128xbf16>
    %c0_7 = arith.constant 0 : index
    %c0_8 = arith.constant 0 : index
    %8 = vector.load %arg5[%c0_7, %c0_8] : memref<1x128xf32, #tpu.memory_space<vmem>>, vector<1x128xf32>
    %cst_9 = arith.constant dense<0.000000e+00> : vector<16x128xf32>
    %9 = tpu.matmul %6, %7, %cst_9 {dimension_numbers = #tpu.dot_dimension_numbers<[1], [0], [0], [1], [0, 0, 1, 1], [], []>} : vector<16x128xbf16>, vector<128x128xbf16>, vector<16x128xf32> -> vector<16x128xf32>
    %10 = vector.broadcast %8 : vector<1x128xf32> to vector<16x128xf32>
    %11 = arith.addf %9, %10 : vector<16x128xf32>
    %12 = arith.truncf %11 : vector<16x128xf32> to vector<16x128xbf16>
    %c0_10 = arith.constant 0 : index
    %c0_11 = arith.constant 0 : index
    %13 = vector.load %arg6[%c0_10, %c0_11] : memref<128x128xbf16, #tpu.memory_space<vmem>>, vector<128x128xbf16>
    %c0_12 = arith.constant 0 : index
    %c0_13 = arith.constant 0 : index
    %14 = vector.load %arg7[%c0_12, %c0_13] : memref<1x128xf32, #tpu.memory_space<vmem>>, vector<1x128xf32>
    %cst_14 = arith.constant dense<0.000000e+00> : vector<16x128xf32>
    %15 = tpu.matmul %12, %13, %cst_14 {dimension_numbers = #tpu.dot_dimension_numbers<[1], [0], [0], [1], [0, 0, 1, 1], [], []>} : vector<16x128xbf16>, vector<128x128xbf16>, vector<16x128xf32> -> vector<16x128xf32>
    %16 = vector.broadcast %14 : vector<1x128xf32> to vector<16x128xf32>
    %17 = arith.addf %15, %16 : vector<16x128xf32>
    %cst_15 = arith.constant dense<0xFF800000> : vector<16xf32>
    %18 = vector.multi_reduction <maximumf>, %17, %cst_15 [1] : vector<16x128xf32> to vector<16xf32>
    %19 = vector.shape_cast %18 : vector<16xf32> to vector<16x1xf32>
    %20 = vector.broadcast %19 : vector<16x1xf32> to vector<16x128xf32>
    %21 = arith.subf %17, %20 : vector<16x128xf32>
    %22 = math.exp %21 : vector<16x128xf32>
    %cst_16 = arith.constant dense<0.000000e+00> : vector<16xf32>
    %23 = vector.multi_reduction <add>, %22, %cst_16 [1] : vector<16x128xf32> to vector<16xf32>
    %24 = vector.shape_cast %23 : vector<16xf32> to vector<16x1xf32>
    %25 = tpu.reciprocal %24 {approx = true} : vector<16x1xf32> -> vector<16x1xf32>
    %26 = vector.broadcast %25 : vector<16x1xf32> to vector<16x128xf32>
    %27 = arith.mulf %22, %26 : vector<16x128xf32>
    %28 = arith.truncf %27 : vector<16x128xf32> to vector<16x128xbf16>
    %c0_17 = arith.constant 0 : index
    %c0_18 = arith.constant 0 : index
    %29 = vector.load %arg8[%c0_17, %c0_18] : memref<16x128xbf16, #tpu.memory_space<vmem>>, vector<16x128xbf16>
    tpu.vector_store %arg8[%c0_17, %c0_18], %28 {strides = array<i32>} : memref<16x128xbf16, #tpu.memory_space<vmem>>, vector<16x128xbf16>,
    return
  }
  func.func @transform_0(%arg0: i32) -> (i32, i32) {
    %c0_i32 = arith.constant 0 : i32
    %c0_i32_0 = arith.constant 0 : i32
    return %arg0, %c0_i32 : i32, i32
  }
  func.func @transform_1(%arg0: i32) -> (i32, i32) {
    %c0_i32 = arith.constant 0 : i32
    %c0_i32_0 = arith.constant 0 : i32
    %c0_i32_1 = arith.constant 0 : i32
    return %c0_i32, %c0_i32_0 : i32, i32
  }
  func.func @transform_2(%arg0: i32) -> (i32, i32) {
    %c0_i32 = arith.constant 0 : i32
    %c0_i32_0 = arith.constant 0 : i32
    %c0_i32_1 = arith.constant 0 : i32
    return %c0_i32, %c0_i32_0 : i32, i32
  }
  func.func @transform_3(%arg0: i32) -> (i32, i32) {
    %c0_i32 = arith.constant 0 : i32
    %c0_i32_0 = arith.constant 0 : i32
    %c0_i32_1 = arith.constant 0 : i32
    return %c0_i32, %c0_i32_0 : i32, i32
  }
  func.func @transform_4(%arg0: i32) -> (i32, i32) {
    %c0_i32 = arith.constant 0 : i32
    %c0_i32_0 = arith.constant 0 : i32
    %c0_i32_1 = arith.constant 0 : i32
    return %c0_i32, %c0_i32_0 : i32, i32
  }
  func.func @transform_5(%arg0: i32) -> (i32, i32) {
    %c0_i32 = arith.constant 0 : i32
    %c0_i32_0 = arith.constant 0 : i32
    %c0_i32_1 = arith.constant 0 : i32
    return %c0_i32, %c0_i32_0 : i32, i32
  }
  func.func @transform_6(%arg0: i32) -> (i32, i32) {
    %c0_i32 = arith.constant 0 : i32
    %c0_i32_0 = arith.constant 0 : i32
    %c0_i32_1 = arith.constant 0 : i32
    return %c0_i32, %c0_i32_0 : i32, i32
  }
  func.func @transform_7(%arg0: i32) -> (i32, i32) {
    %c0_i32 = arith.constant 0 : i32
    %c0_i32_0 = arith.constant 0 : i32
    return %arg0, %c0_i32 : i32, i32
  }
}

</mosaic_0001>

<bundles_post_ra>
// kernel: tpu_custom_call.1
= control target key start
LH: loop header
LB: loop body
LE: loop exit
PB: predicated region body
PF: predicated region fallthrough
CT: control target
= control target key end

     0   :  { %12 = vsyncpa [#allocation3], 0  ;;  %s937_s0 = inlined_call_operand.hbm [shape: bf16[16,128], index: 0, kind: input, shape index: {}]   ;;  %s938_s1 = inlined_call_operand.hbm [shape: bf16[128,128], index: 1, kind: input, shape index: {}]   ;;  %s939_s2 = inlined_call_operand.vmem [shape: f32[1,128], index: 2, kind: input, shape index: {}]   ;;  %s940_s3 = inlined_call_operand.hbm [shape: bf16[128,128], index: 3, kind: input, shape index: {}]   ;;  %s941_s4 = inlined_call_operand.vmem [shape: f32[1,128], index: 4, kind: input, shape index: {}]   ;;  %s942_s5 = inlined_call_operand.hbm [shape: bf16[128,128], index: 5, kind: input, shape index: {}]   ;;  %s943_s6 = inlined_call_operand.vmem [shape: f32[1,128], index: 6, kind: input, shape index: {}]   ;;  %s944_s7 = inlined_call_operand.hbm [shape: bf16[16,128], index: 7, kind: output, shape index: {}]  }
   0x1   :  { %13 = vsyncpa [#allocation6], 0 }
   0x2   :  { %14 = vsyncpa [#allocation9], 0 }
   0x3   :  { %15 = vsyncpa [#allocation4], 0  ;;  %s760_s24 = smov [#allocation5]   ;;  %s761_s26 = smov [#allocation2]  }
   0x4   :  { %s33_s25 = sshll.u32 %s760_s24, 4  ;;  %s21_s27 = sshll.u32 %s761_s26, 4  ;;  %s34_s25 = int_to_ptr.vmem [resolvable:$true] %s33_s25  ;;  %s809_s27 = int_to_ptr.vmem [resolvable:$true] %s21_s27 }
   0x5   :  { %s642_s30 = scalar_lea.hbm %s938_s1, 1024 }
   0x6   :  { %p643_p0 = scmp.ne.s32.totalorder %s938_s1, %s642_s30  ;;  %p646_p1 = scmp.lt.u32.totalorder %s642_s30, %s938_s1 }
   0x8   :  { %p648_p2 = pnand %p646_p1, %p643_p0 }
   0xa   :  { %651 = shalt.err (!%p648_p2)
}
   0xb   :  { %s652_s12 = scalar_lea.vmem %s34_s25, 1024  ;;  %p657_p4 = scmp.lt.s32.totalorder %s34_s25, %s34_s25 }
   0xc   :  { %p653_p3 = scmp.ne.s32.totalorder %s34_s25, %s652_s12  ;;  %p658_p5 = scmp.lt.s32.totalorder %s652_s12, %s652_s12 }
   0xe   :  { %p659_p6 = por %p658_p5, %p657_p4 }
  0x10   :  { %p660_p7 = pnand %p659_p6, %p653_p3 }
  0x12   :  { %663 = shalt.err (!%p660_p7)
}
  0x13   :  { %s762_s13 = smov 64   ;;  %s763_s14 = smov 4  }
  0x14   :  { %39 = dma.hbm_to_vmem [thread:$0]  %s938_s1, 1024, %s34_s25, [#allocation6], %s762_s13, %s762_s13, %s763_s14  }
  0x15   :  { %s664_s19 = scalar_lea.hbm %s937_s0, 128 }
  0x16   :  { %p665_p8 = scmp.ne.s32.totalorder %s937_s0, %s664_s19  ;;  %p668_p9 = scmp.lt.u32.totalorder %s664_s19, %s937_s0 }
  0x18   :  { %p670_p10 = pnand %p668_p9, %p665_p8 }
  0x1a   :  { %673 = shalt.err (!%p670_p10)
}
  0x1b   :  { %s674_s24 = scalar_lea.vmem %s809_s27, 128  ;;  %p679_p12 = scmp.lt.s32.totalorder %s809_s27, %s809_s27 }
  0x1c   :  { %p675_p11 = scmp.ne.s32.totalorder %s809_s27, %s674_s24  ;;  %p680_p13 = scmp.lt.s32.totalorder %s674_s24, %s674_s24 }
  0x1e   :  { %p681_p0 = por %p680_p13, %p679_p12 }
  0x20   :  { %p682_p1 = pnand %p681_p0, %p675_p11 }
  0x22   :  { %685 = shalt.err (!%p682_p1)
}
  0x23   :  { %27 = dma.hbm_to_vmem [thread:$0]  %s937_s0, 128, %s809_s27, [#allocation3], %s762_s13, %s762_s13, %s763_s14  }
  0x24   :  { %s764_s26 = smov [#allocation7]   ;;  %s765_s29 = smov [#allocation8]  }
  0x25   :  { %s47_s28 = sshll.u32 %s764_s26, 4  ;;  %s61_s30 = sshll.u32 %s765_s29, 4  ;;  %s48_s28 = int_to_ptr.vmem [resolvable:$true] %s47_s28  ;;  %s846_s30 = int_to_ptr.vmem [resolvable:$true] %s61_s30 }
  0x26   :  { %s686_s10 = scalar_lea.hbm %s940_s3, 1024 }
  0x27   :  { %p687_p2 = scmp.ne.s32.totalorder %s940_s3, %s686_s10  ;;  %p690_p3 = scmp.lt.u32.totalorder %s686_s10, %s940_s3 }
  0x29   :  { %p692_p4 = pnand %p690_p3, %p687_p2 }
  0x2b   :  { %695 = shalt.err (!%p692_p4)
}
  0x2c   :  { %s696_s0 = scalar_lea.vmem %s48_s28, 1024  ;;  %p701_p6 = scmp.lt.s32.totalorder %s48_s28, %s48_s28 }
  0x2d   :  { %p697_p5 = scmp.ne.s32.totalorder %s48_s28, %s696_s0  ;;  %p702_p7 = scmp.lt.s32.totalorder %s696_s0, %s696_s0 }
  0x2f   :  { %p703_p8 = por %p702_p7, %p701_p6 }
  0x31   :  { %p704_p9 = pnand %p703_p8, %p697_p5 }
  0x33   :  { %707 = shalt.err (!%p704_p9)
}
  0x34   :  { %53 = dma.hbm_to_vmem [thread:$0]  %s940_s3, 1024, %s48_s28, [#allocation6], %s762_s13, %s762_s13, %s763_s14  }
  0x35   :  { %s708_s20 = scalar_lea.hbm %s942_s5, 1024 }
  0x36   :  { %p709_p10 = scmp.ne.s32.totalorder %s942_s5, %s708_s20  ;;  %p712_p11 = scmp.lt.u32.totalorder %s708_s20, %s942_s5 }
  0x38   :  { %p714_p12 = pnand %p712_p11, %p709_p10 }
  0x3a   :  { %717 = shalt.err (!%p714_p12)
}
  0x3b   :  { %s718_s1 = scalar_lea.vmem %s846_s30, 1024  ;;  %p723_p0 = scmp.lt.s32.totalorder %s846_s30, %s846_s30 }
  0x3c   :  { %p719_p13 = scmp.ne.s32.totalorder %s846_s30, %s718_s1  ;;  %p724_p1 = scmp.lt.s32.totalorder %s718_s1, %s718_s1 }
  0x3e   :  { %p725_p2 = por %p724_p1, %p723_p0 }
  0x40   :  { %p726_p3 = pnand %p725_p2, %p719_p13 }
  0x42   :  { %729 = shalt.err (!%p726_p3)
}
  0x43   :  { %67 = dma.hbm_to_vmem [thread:$0]  %s942_s5, 1024, %s846_s30, [#allocation9], %s762_s13, %s762_s13, %s763_s14  }
  0x44   :  { %752 = dma.done.wait [#allocation3], 128  }
  0x45   :  { %753 = vsyncadd [#allocation3], 4294967168 }
  0x46   :  { %754 = dma.done.wait [#allocation6], 2048  }
  0x47   :  { %755 = vsyncadd [#allocation6], 4294965248 }
  0x48   :  { %756 = dma.done.wait [#allocation9], 1024  }
  0x49   :  { %757 = vsyncadd [#allocation9], 4294966272  ;;  %v766_v0 = vmov 0.0   ;;  %vm767_vm0 = vmmov 0   ;;  %v609_v1 = vld [vmem:[#allocation5] sm:$0xff]   ;;  %v610_v2 = vld [vmem:[#allocation5 + $0x8] sm:$0xff]  }
  0x4a   :  { %540 = vmatprep.subr.bf16.mxu0 %v766_v0  ;;  %556 = vmatprep.mubr.msk.bf16.mxu0 %vm767_vm0, %v766_v0  ;;  %v611_v3 = vld [vmem:[#allocation5 + $0x10] sm:$0xff]   ;;  %v618_v4 = vld [vmem:[#allocation7] sm:$0xff]   ;;  %v612_v5 = vld [vmem:[#allocation5 + $0x18] sm:$0xff]  }
  0x4b   :  { %560 = vmatprep.subr.bf16.mxu1 %v766_v0  ;;  %576 = vmatprep.mubr.msk.bf16.mxu1 %vm767_vm0, %v766_v0  ;;  %v619_v6 = vld [vmem:[#allocation7 + $0x8] sm:$0xff]   ;;  %v613_v7 = vld [vmem:[#allocation5 + $0x20] sm:$0xff]   ;;  %v620_v8 = vld [vmem:[#allocation7 + $0x10] sm:$0xff]  }
  0x4c   :  { %541 = vmatpush3.bf16.msra.mxu0 %v609_v1  ;;  %561 = vmatpush3.bf16.msra.mxu1 %v618_v4  ;;  %v614_v9 = vld [vmem:[#allocation5 + $0x28] sm:$0xff]   ;;  %v621_v10 = vld [vmem:[#allocation7 + $0x18] sm:$0xff]   ;;  %v615_v11 = vld [vmem:[#allocation5 + $0x30] sm:$0xff]  }
  0x4d   :  { %542 = vmatprep.subr.bf16.mxu0 %v766_v0  ;;  %562 = vmatprep.subr.bf16.mxu1 %v766_v0  ;;  %v622_v12 = vld [vmem:[#allocation7 + $0x20] sm:$0xff]   ;;  %v616_v13 = vld [vmem:[#allocation5 + $0x38] sm:$0xff]   ;;  %v623_v14 = vld [vmem:[#allocation7 + $0x28] sm:$0xff]  }
  0x4e   :  { %v617_v15 = vld [vmem:[#allocation2] sm:$0xff]   ;;  %v624_v16 = vld [vmem:[#allocation7 + $0x30] sm:$0xff]   ;;  %v626_v18 = vld [vmem:[#allocation8] sm:$0xff]  }
  0x4f   :  { %v625_v17 = vld [vmem:[#allocation7 + $0x38] sm:$0xff]   ;;  %v627_v19 = vld [vmem:[#allocation8 + $0x8] sm:$0xff]   ;;  %v628_v20 = vld [vmem:[#allocation8 + $0x10] sm:$0xff]  }
  0x50   :  { %543 = vmatpush3.bf16.msra.mxu0 %v610_v2  ;;  %563 = vmatpush3.bf16.msra.mxu1 %v619_v6  ;;  %v629_v21 = vld [vmem:[#allocation8 + $0x18] sm:$0xff]   ;;  %v630_v22 = vld [vmem:[#allocation8 + $0x20] sm:$0xff]   ;;  %v631_v23 = vld [vmem:[#allocation8 + $0x28] sm:$0xff]  }
  0x51   :  { %544 = vmatprep.subr.bf16.mxu0 %v766_v0  ;;  %564 = vmatprep.subr.bf16.mxu1 %v766_v0  ;;  %v476_v24 = vld [vmem:[%s939_s2] ss:$0 sm:$0xff]  ;;  %v632_v32 = vld [vmem:[#allocation8 + $0x30] sm:$0xff]  }
  0x52   :  { %v633_v33 = vld [vmem:[#allocation8 + $0x38] sm:$0xff]  }
  0x53   :  { %v486_v34 = vld [vmem:[%s941_s4] ss:$0 sm:$0xff]  ;;  %s768_s4 = smov [#allocation10]  }
  0x54   :  { %545 = vmatpush3.bf16.msra.mxu0 %v611_v3  ;;  %565 = vmatpush3.bf16.msra.mxu1 %v620_v8  ;;  %v495_v42 = vld [vmem:[%s943_s6] ss:$0 sm:$0xff]  ;;  %s462_s6 = sshll.u32 %s768_s4, 4  ;;  %s463_s6 = int_to_ptr.vmem [resolvable:$true] %s462_s6 }
  0x55   :  { %546 = vmatprep.subr.bf16.mxu0 %v766_v0  ;;  %566 = vmatprep.subr.bf16.mxu1 %v766_v0  ;;  %s730_s8 = scalar_lea.vmem %s463_s6, 128  ;;  %p735_p5 = scmp.lt.s32.totalorder %s463_s6, %s463_s6 }
  0x56   :  { %p731_p4 = scmp.ne.s32.totalorder %s463_s6, %s730_s8  ;;  %p736_p6 = scmp.lt.s32.totalorder %s730_s8, %s730_s8 }
  0x58   :  { %547 = vmatpush3.bf16.msra.mxu0 %v612_v5  ;;  %567 = vmatpush3.bf16.msra.mxu1 %v621_v10  ;;  %p737_p7 = por %p736_p6, %p735_p5 }
  0x59   :  { %548 = vmatprep.subr.bf16.mxu0 %v766_v0  ;;  %568 = vmatprep.subr.bf16.mxu1 %v766_v0 }
  0x5a   :  { %p738_p8 = pnand %p737_p7, %p731_p4 }
  0x5c   :  { %549 = vmatpush3.bf16.msra.mxu0 %v613_v7  ;;  %569 = vmatpush3.bf16.msra.mxu1 %v622_v12 }
  0x5d   :  { %550 = vmatprep.subr.bf16.mxu0 %v766_v0  ;;  %570 = vmatprep.subr.bf16.mxu1 %v766_v0 }
  0x60   :  { %551 = vmatpush3.bf16.msra.mxu0 %v614_v9  ;;  %571 = vmatpush3.bf16.msra.mxu1 %v623_v14 }
  0x61   :  { %552 = vmatprep.subr.bf16.mxu0 %v766_v0  ;;  %572 = vmatprep.subr.bf16.mxu1 %v766_v0 }
  0x64   :  { %553 = vmatpush3.bf16.msra.mxu0 %v615_v11  ;;  %573 = vmatpush3.bf16.msra.mxu1 %v624_v16 }
  0x65   :  { %554 = vmatprep.subr.bf16.mxu0 %v766_v0  ;;  %574 = vmatprep.subr.bf16.mxu1 %v766_v0 }
  0x68   :  { %555 = vmatpush3.bf16.msra.mxu0 %v616_v13  ;;  %575 = vmatpush3.bf16.msra.mxu1 %v625_v17 }
  0x69   :  { %580 = vmatprep.subr.bf16.mxu0 %v766_v0 }
  0x6b   :  { %557 = vmatmul.mubr.bf16.vlgmr.msra.gmra.mrb[0].mxu0 %v617_v15 }
  0x6c   :  { %596 = vmatprep.mubr.msk.bf16.mxu0 %vm767_vm0, %v766_v0  ;;  %581 = vmatpush3.bf16.msra.mxu0 %v626_v18 }
  0x6d   :  { %582 = vmatprep.subr.bf16.mxu0 %v766_v0 }
  0x70   :  { %583 = vmatpush3.bf16.msra.mxu0 %v627_v19 }
  0x71   :  { %584 = vmatprep.subr.bf16.mxu0 %v766_v0 }
  0x74   :  { %585 = vmatpush3.bf16.msra.mxu0 %v628_v20 }
  0x75   :  { %586 = vmatprep.subr.bf16.mxu0 %v766_v0 }
  0x78   :  { %587 = vmatpush3.bf16.msra.mxu0 %v629_v21 }
  0x79   :  { %588 = vmatprep.subr.bf16.mxu0 %v766_v0 }
  0x7c   :  { %589 = vmatpush3.bf16.msra.mxu0 %v630_v22 }
  0x7d   :  { %590 = vmatprep.subr.bf16.mxu0 %v766_v0 }
  0x80   :  { %591 = vmatpush3.bf16.msra.mxu0 %v631_v23 }
  0x81   :  { %592 = vmatprep.subr.bf16.mxu0 %v766_v0 }
  0x84   :  { %593 = vmatpush3.bf16.msra.mxu0 %v632_v32 }
  0x85   :  { %594 = vmatprep.subr.bf16.mxu0 %v766_v0 }
  0x88   :  { %595 = vmatpush3.bf16.msra.mxu0 %v633_v33 }
 0x13e   :  { %v196_v25 = vpop.f32.mrb[0].mxu0 }
 0x13f   :  { %v558_v26 = vpop.f32.mrb[1].mxu0  ;;  %v197_v28 = vadd.f32 %v476_v24, %v196_v25 }
 0x140   :  { %v199_v27 = vpop.f32.mrb[2].mxu0 }
 0x141   :  { %v200_v29 = vadd.f32 %v476_v24, %v199_v27  ;;  %v559_v30 = vpop.f32.mrb[3].mxu0 }
 0x143   :  { %v203_v31 = vpack.c.bf16 %v200_v29, %v197_v28 }
 0x145   :  { %577 = vmatmul.mubr.bf16.vlgmr.msra.gmra.mrb[0].mxu1 %v203_v31 }
 0x218   :  { %v309_v35 = vpop.f32.mrb[0].mxu1 }
 0x219   :  { %v578_v36 = vpop.f32.mrb[1].mxu1  ;;  %v310_v38 = vadd.f32 %v486_v34, %v309_v35 }
 0x21a   :  { %v312_v37 = vpop.f32.mrb[2].mxu1 }
 0x21b   :  { %v313_v39 = vadd.f32 %v486_v34, %v312_v37  ;;  %v579_v40 = vpop.f32.mrb[3].mxu1 }
 0x21d   :  { %v316_v41 = vpack.c.bf16 %v313_v39, %v310_v38 }
 0x21f   :  { %597 = vmatmul.mubr.bf16.vlgmr.msra.gmra.mrb[4].mxu0 %v316_v41 }
 0x2f2   :  { %v422_v43 = vpop.f32.mrb[4].mxu0 }
 0x2f3   :  { %v423_v44 = vadd.f32 %v495_v42, %v422_v43  ;;  %v598_v45 = vpop.f32.mrb[5].mxu0 }
 0x2f4   :  { %v425_v46 = vpop.f32.mrb[6].mxu0 }
 0x2f5   :  { %429 = vmax.xlane.f32.xlu0 %v423_v44  ;;  %v599_v47 = vpop.f32.mrb[7].mxu0  ;;  %v426_v48 = vadd.f32 %v495_v42, %v425_v46 }
 0x2f9   :  { %431 = vmax.xlane.f32.xlu0 %v426_v48 }
 0x382   :  { %v430_v49 = vpop.xlane.xlu0 %429 }
 0x383   :  { %v433_v50 = vsub.f32 %v423_v44, %v430_v49 }
 0x385   :  { %v435_v51 = vmul.f32 1.442695, %v433_v50 }
 0x386   :  { %v432_v52 = vpop.xlane.xlu0 %431 }
 0x387   :  { %634 = vpow2.f32 %v435_v51  ;;  %v434_v53 = vsub.f32 %v426_v48, %v432_v52 }
 0x389   :  { %v437_v54 = vmul.f32 1.442695, %v434_v53 }
 0x38b   :  { %636 = vpow2.f32 %v437_v54 }
 0x391   :  { %v635_v55 = vpop.eup %634 }
 0x392   :  { %439 = vadd.xlane.f32.xlu1 %v635_v55 }
 0x395   :  { %v637_v56 = vpop.eup %636 }
 0x396   :  { %441 = vadd.xlane.f32.xlu1 %v637_v56 }
 0x41f   :  { %v440_v57 = vpop.xlane.xlu1 %439 }
 0x420   :  { %638 = vrcp.f32 %v440_v57 }
 0x423   :  { %v442_v58 = vpop.xlane.xlu1 %441 }
 0x424   :  { %640 = vrcp.f32 %v442_v58 }
 0x42a   :  { %v639_v59 = vpop.eup %638 }
 0x42b   :  { %v445_v61 = vmul.f32 %v639_v59, %v635_v55 }
 0x42e   :  { %v641_v60 = vpop.eup %640 }
 0x42f   :  { %v446_v62 = vmul.f32 %v641_v60, %v637_v56 }
 0x431   :  { %v511_v63 = vpack.c.bf16 %v446_v62, %v445_v61 }
 0x433   :  { %512 = vst [vmem:[#allocation10] sm:$0xff] %v511_v63  }
 0x434   :  { %741 = shalt.err (!%p738_p8)
}
 0x435   :  { %s742_s11 = scalar_lea.hbm %s944_s7, 128 }
 0x436   :  { %p743_p9 = scmp.ne.s32.totalorder %s944_s7, %s742_s11  ;;  %p746_p10 = scmp.lt.u32.totalorder %s742_s11, %s944_s7 }
 0x438   :  { %p748_p11 = pnand %p746_p10, %p743_p9 }
 0x43a   :  { %751 = shalt.err (!%p748_p11)
}
 0x43b   :  { %468 = dma.vmem_to_hbm [thread:$0]  %s463_s6, 128, %s944_s7, [#allocation4], %s762_s13, %s762_s13, %s763_s14  }
 0x43c   :  { %758 = dma.done.wait [#allocation4], 128  }
 0x43d   :  { %759 = vsyncadd [#allocation4], 4294967168 }
 0x43e   :  { %472 = vsyncpa [#allocation3], 1 }
 0x43f   :  { %473 = vsyncpa [#allocation6], 1 }
 0x440   :  { %474 = vsyncpa [#allocation9], 1 }
 0x441   :  { %475 = vsyncpa [#allocation4], 1 }

// kernel: tpu_custom_call.1
= control target key start
LH: loop header
LB: loop body
LE: loop exit
PB: predicated region body
PF: predicated region fallthrough
CT: control target
= control target key end

     0   :  { %12 = vsyncpa [#allocation3], 0  ;;  %s937_s0 = inlined_call_operand.hbm [shape: bf16[16,128], index: 0, kind: input, shape index: {}]   ;;  %s938_s1 = inlined_call_operand.hbm [shape: bf16[128,128], index: 1, kind: input, shape index: {}]   ;;  %s939_s2 = inlined_call_operand.vmem [shape: f32[1,128], index: 2, kind: input, shape index: {}]   ;;  %s940_s3 = inlined_call_operand.hbm [shape: bf16[128,128], index: 3, kind: input, shape index: {}]   ;;  %s941_s4 = inlined_call_operand.vmem [shape: f32[1,128], index: 4, kind: input, shape index: {}]   ;;  %s942_s5 = inlined_call_operand.hbm [shape: bf16[128,128], index: 5, kind: input, shape index: {}]   ;;  %s943_s6 = inlined_call_operand.vmem [shape: f32[1,128], index: 6, kind: input, shape index: {}]   ;;  %s944_s7 = inlined_call_operand.hbm [shape: bf16[16,128], index: 7, kind: output, shape index: {}]  }
   0x1   :  { %13 = vsyncpa [#allocation6], 0 }
   0x2   :  { %14 = vsyncpa [#allocation9], 0 }
   0x3   :  { %15 = vsyncpa [#allocation4], 0  ;;  %s760_s24 = smov [#allocation5]   ;;  %s761_s26 = smov [#allocation2]  }
   0x4   :  { %s33_s25 = sshll.u32 %s760_s24, 4  ;;  %s21_s27 = sshll.u32 %s761_s26, 4  ;;  %s34_s25 = int_to_ptr.vmem [resolvable:$true] %s33_s25  ;;  %s809_s27 = int_to_ptr.vmem [resolvable:$true] %s21_s27 }
   0x5   :  { %s642_s30 = scalar_lea.hbm %s938_s1, 1024 }
   0x6   :  { %p643_p0 = scmp.ne.s32.totalorder %s938_s1, %s642_s30  ;;  %p646_p1 = scmp.lt.u32.totalorder %s642_s30, %s938_s1 }
   0x8   :  { %p648_p2 = pnand %p646_p1, %p643_p0 }
   0xa   :  { %651 = shalt.err (!%p648_p2)
}
   0xb   :  { %s652_s12 = scalar_lea.vmem %s34_s25, 1024  ;;  %p657_p4 = scmp.lt.s32.totalorder %s34_s25, %s34_s25 }
   0xc   :  { %p653_p3 = scmp.ne.s32.totalorder %s34_s25, %s652_s12  ;;  %p658_p5 = scmp.lt.s32.totalorder %s652_s12, %s652_s12 }
   0xe   :  { %p659_p6 = por %p658_p5, %p657_p4 }
  0x10   :  { %p660_p7 = pnand %p659_p6, %p653_p3 }
  0x12   :  { %663 = shalt.err (!%p660_p7)
}
  0x13   :  { %s762_s13 = smov 64   ;;  %s763_s14 = smov 4  }
  0x14   :  { %39 = dma.hbm_to_vmem [thread:$0]  %s938_s1, 1024, %s34_s25, [#allocation6], %s762_s13, %s762_s13, %s763_s14  }
  0x15   :  { %s664_s19 = scalar_lea.hbm %s937_s0, 128 }
  0x16   :  { %p665_p8 = scmp.ne.s32.totalorder %s937_s0, %s664_s19  ;;  %p668_p9 = scmp.lt.u32.totalorder %s664_s19, %s937_s0 }
  0x18   :  { %p670_p10 = pnand %p668_p9, %p665_p8 }
  0x1a   :  { %673 = shalt.err (!%p670_p10)
}
  0x1b   :  { %s674_s24 = scalar_lea.vmem %s809_s27, 128  ;;  %p679_p12 = scmp.lt.s32.totalorder %s809_s27, %s809_s27 }
  0x1c   :  { %p675_p11 = scmp.ne.s32.totalorder %s809_s27, %s674_s24  ;;  %p680_p13 = scmp.lt.s32.totalorder %s674_s24, %s674_s24 }
  0x1e   :  { %p681_p0 = por %p680_p13, %p679_p12 }
  0x20   :  { %p682_p1 = pnand %p681_p0, %p675_p11 }
  0x22   :  { %685 = shalt.err (!%p682_p1)
}
  0x23   :  { %27 = dma.hbm_to_vmem [thread:$0]  %s937_s0, 128, %s809_s27, [#allocation3], %s762_s13, %s762_s13, %s763_s14  }
  0x24   :  { %s764_s26 = smov [#allocation7]   ;;  %s765_s29 = smov [#allocation8]  }
  0x25   :  { %s47_s28 = sshll.u32 %s764_s26, 4  ;;  %s61_s30 = sshll.u32 %s765_s29, 4  ;;  %s48_s28 = int_to_ptr.vmem [resolvable:$true] %s47_s28  ;;  %s846_s30 = int_to_ptr.vmem [resolvable:$true] %s61_s30 }
  0x26   :  { %s686_s10 = scalar_lea.hbm %s940_s3, 1024 }
  0x27   :  { %p687_p2 = scmp.ne.s32.totalorder %s940_s3, %s686_s10  ;;  %p690_p3 = scmp.lt.u32.totalorder %s686_s10, %s940_s3 }
  0x29   :  { %p692_p4 = pnand %p690_p3, %p687_p2 }
  0x2b   :  { %695 = shalt.err (!%p692_p4)
}
  0x2c   :  { %s696_s0 = scalar_lea.vmem %s48_s28, 1024  ;;  %p701_p6 = scmp.lt.s32.totalorder %s48_s28, %s48_s28 }
  0x2d   :  { %p697_p5 = scmp.ne.s32.totalorder %s48_s28, %s696_s0  ;;  %p702_p7 = scmp.lt.s32.totalorder %s696_s0, %s696_s0 }
  0x2f   :  { %p703_p8 = por %p702_p7, %p701_p6 }
  0x31   :  { %p704_p9 = pnand %p703_p8, %p697_p5 }
  0x33   :  { %707 = shalt.err (!%p704_p9)
}
  0x34   :  { %53 = dma.hbm_to_vmem [thread:$0]  %s940_s3, 1024, %s48_s28, [#allocation6], %s762_s13, %s762_s13, %s763_s14  }
  0x35   :  { %s708_s20 = scalar_lea.hbm %s942_s5, 1024 }
  0x36   :  { %p709_p10 = scmp.ne.s32.totalorder %s942_s5, %s708_s20  ;;  %p712_p11 = scmp.lt.u32.totalorder %s708_s20, %s942_s5 }
  0x38   :  { %p714_p12 = pnand %p712_p11, %p709_p10 }
  0x3a   :  { %717 = shalt.err (!%p714_p12)
}
  0x3b   :  { %s718_s1 = scalar_lea.vmem %s846_s30, 1024  ;;  %p723_p0 = scmp.lt.s32.totalorder %s846_s30, %s846_s30 }
  0x3c   :  { %p719_p13 = scmp.ne.s32.totalorder %s846_s30, %s718_s1  ;;  %p724_p1 = scmp.lt.s32.totalorder %s718_s1, %s718_s1 }
  0x3e   :  { %p725_p2 = por %p724_p1, %p723_p0 }
  0x40   :  { %p726_p3 = pnand %p725_p2, %p719_p13 }
  0x42   :  { %729 = shalt.err (!%p726_p3)
}
  0x43   :  { %67 = dma.hbm_to_vmem [thread:$0]  %s942_s5, 1024, %s846_s30, [#allocation9], %s762_s13, %s762_s13, %s763_s14  }
  0x44   :  { %752 = dma.done.wait [#allocation3], 128  }
  0x45   :  { %753 = vsyncadd [#allocation3], 4294967168 }
  0x46   :  { %754 = dma.done.wait [#allocation6], 2048  }
  0x47   :  { %755 = vsyncadd [#allocation6], 4294965248 }
  0x48   :  { %756 = dma.done.wait [#allocation9], 1024  }
  0x49   :  { %757 = vsyncadd [#allocation9], 4294966272  ;;  %v766_v0 = vmov 0.0   ;;  %vm767_vm0 = vmmov 0   ;;  %v609_v1 = vld [vmem:[#allocation5] sm:$0xff]   ;;  %v610_v2 = vld [vmem:[#allocation5 + $0x8] sm:$0xff]  }
  0x4a   :  { %540 = vmatprep.subr.bf16.mxu0 %v766_v0  ;;  %556 = vmatprep.mubr.msk.bf16.mxu0 %vm767_vm0, %v766_v0  ;;  %v611_v3 = vld [vmem:[#allocation5 + $0x10] sm:$0xff]   ;;  %v618_v4 = vld [vmem:[#allocation7] sm:$0xff]   ;;  %v612_v5 = vld [vmem:[#allocation5 + $0x18] sm:$0xff]  }
  0x4b   :  { %560 = vmatprep.subr.bf16.mxu1 %v766_v0  ;;  %576 = vmatprep.mubr.msk.bf16.mxu1 %vm767_vm0, %v766_v0  ;;  %v619_v6 = vld [vmem:[#allocation7 + $0x8] sm:$0xff]   ;;  %v613_v7 = vld [vmem:[#allocation5 + $0x20] sm:$0xff]   ;;  %v620_v8 = vld [vmem:[#allocation7 + $0x10] sm:$0xff]  }
  0x4c   :  { %541 = vmatpush3.bf16.msra.mxu0 %v609_v1  ;;  %561 = vmatpush3.bf16.msra.mxu1 %v618_v4  ;;  %v614_v9 = vld [vmem:[#allocation5 + $0x28] sm:$0xff]   ;;  %v621_v10 = vld [vmem:[#allocation7 + $0x18] sm:$0xff]   ;;  %v615_v11 = vld [vmem:[#allocation5 + $0x30] sm:$0xff]  }
  0x4d   :  { %542 = vmatprep.subr.bf16.mxu0 %v766_v0  ;;  %562 = vmatprep.subr.bf16.mxu1 %v766_v0  ;;  %v622_v12 = vld [vmem:[#allocation7 + $0x20] sm:$0xff]   ;;  %v616_v13 = vld [vmem:[#allocation5 + $0x38] sm:$0xff]   ;;  %v623_v14 = vld [vmem:[#allocation7 + $0x28] sm:$0xff]  }
  0x4e   :  { %v617_v15 = vld [vmem:[#allocation2] sm:$0xff]   ;;  %v624_v16 = vld [vmem:[#allocation7 + $0x30] sm:$0xff]   ;;  %v626_v18 = vld [vmem:[#allocation8] sm:$0xff]  }
  0x4f   :  { %v625_v17 = vld [vmem:[#allocation7 + $0x38] sm:$0xff]   ;;  %v627_v19 = vld [vmem:[#allocation8 + $0x8] sm:$0xff]   ;;  %v628_v20 = vld [vmem:[#allocation8 + $0x10] sm:$0xff]  }
  0x50   :  { %543 = vmatpush3.bf16.msra.mxu0 %v610_v2  ;;  %563 = vmatpush3.bf16.msra.mxu1 %v619_v6  ;;  %v629_v21 = vld [vmem:[#allocation8 + $0x18] sm:$0xff]   ;;  %v630_v22 = vld [vmem:[#allocation8 + $0x20] sm:$0xff]   ;;  %v631_v23 = vld [vmem:[#allocation8 + $0x28] sm:$0xff]  }
  0x51   :  { %544 = vmatprep.subr.bf16.mxu0 %v766_v0  ;;  %564 = vmatprep.subr.bf16.mxu1 %v766_v0  ;;  %v476_v24 = vld [vmem:[%s939_s2] ss:$0 sm:$0xff]  ;;  %v632_v32 = vld [vmem:[#allocation8 + $0x30] sm:$0xff]  }
  0x52   :  { %v633_v33 = vld [vmem:[#allocation8 + $0x38] sm:$0xff]  }
  0x53   :  { %v486_v34 = vld [vmem:[%s941_s4] ss:$0 sm:$0xff]  ;;  %s768_s4 = smov [#allocation10]  }
  0x54   :  { %545 = vmatpush3.bf16.msra.mxu0 %v611_v3  ;;  %565 = vmatpush3.bf16.msra.mxu1 %v620_v8  ;;  %v495_v42 = vld [vmem:[%s943_s6] ss:$0 sm:$0xff]  ;;  %s462_s6 = sshll.u32 %s768_s4, 4  ;;  %s463_s6 = int_to_ptr.vmem [resolvable:$true] %s462_s6 }
  0x55   :  { %546 = vmatprep.subr.bf16.mxu0 %v766_v0  ;;  %566 = vmatprep.subr.bf16.mxu1 %v766_v0  ;;  %s730_s8 = scalar_lea.vmem %s463_s6, 128  ;;  %p735_p5 = scmp.lt.s32.totalorder %s463_s6, %s463_s6 }
  0x56   :  { %p731_p4 = scmp.ne.s32.totalorder %s463_s6, %s730_s8  ;;  %p736_p6 = scmp.lt.s32.totalorder %s730_s8, %s730_s8 }
  0x58   :  { %547 = vmatpush3.bf16.msra.mxu0 %v612_v5  ;;  %567 = vmatpush3.bf16.msra.mxu1 %v621_v10  ;;  %p737_p7 = por %p736_p6, %p735_p5 }
  0x59   :  { %548 = vmatprep.subr.bf16.mxu0 %v766_v0  ;;  %568 = vmatprep.subr.bf16.mxu1 %v766_v0 }
  0x5a   :  { %p738_p8 = pnand %p737_p7, %p731_p4 }
  0x5c   :  { %549 = vmatpush3.bf16.msra.mxu0 %v613_v7  ;;  %569 = vmatpush3.bf16.msra.mxu1 %v622_v12 }
  0x5d   :  { %550 = vmatprep.subr.bf16.mxu0 %v766_v0  ;;  %570 = vmatprep.subr.bf16.mxu1 %v766_v0 }
  0x60   :  { %551 = vmatpush3.bf16.msra.mxu0 %v614_v9  ;;  %571 = vmatpush3.bf16.msra.mxu1 %v623_v14 }
  0x61   :  { %552 = vmatprep.subr.bf16.mxu0 %v766_v0  ;;  %572 = vmatprep.subr.bf16.mxu1 %v766_v0 }
  0x64   :  { %553 = vmatpush3.bf16.msra.mxu0 %v615_v11  ;;  %573 = vmatpush3.bf16.msra.mxu1 %v624_v16 }
  0x65   :  { %554 = vmatprep.subr.bf16.mxu0 %v766_v0  ;;  %574 = vmatprep.subr.bf16.mxu1 %v766_v0 }
  0x68   :  { %555 = vmatpush3.bf16.msra.mxu0 %v616_v13  ;;  %575 = vmatpush3.bf16.msra.mxu1 %v625_v17 }
  0x69   :  { %580 = vmatprep.subr.bf16.mxu0 %v766_v0 }
  0x6b   :  { %557 = vmatmul.mubr.bf16.vlgmr.msra.gmra.mrb[0].mxu0 %v617_v15 }
  0x6c   :  { %596 = vmatprep.mubr.msk.bf16.mxu0 %vm767_vm0, %v766_v0  ;;  %581 = vmatpush3.bf16.msra.mxu0 %v626_v18 }
  0x6d   :  { %582 = vmatprep.subr.bf16.mxu0 %v766_v0 }
  0x70   :  { %583 = vmatpush3.bf16.msra.mxu0 %v627_v19 }
  0x71   :  { %584 = vmatprep.subr.bf16.mxu0 %v766_v0 }
  0x74   :  { %585 = vmatpush3.bf16.msra.mxu0 %v628_v20 }
  0x75   :  { %586 = vmatprep.subr.bf16.mxu0 %v766_v0 }
  0x78   :  { %587 = vmatpush3.bf16.msra.mxu0 %v629_v21 }
  0x79   :  { %588 = vmatprep.subr.bf16.mxu0 %v766_v0 }
  0x7c   :  { %589 = vmatpush3.bf16.msra.mxu0 %v630_v22 }
  0x7d   :  { %590 = vmatprep.subr.bf16.mxu0 %v766_v0 }
  0x80   :  { %591 = vmatpush3.bf16.msra.mxu0 %v631_v23 }
  0x81   :  { %592 = vmatprep.subr.bf16.mxu0 %v766_v0 }
  0x84   :  { %593 = vmatpush3.bf16.msra.mxu0 %v632_v32 }
  0x85   :  { %594 = vmatprep.subr.bf16.mxu0 %v766_v0 }
  0x88   :  { %595 = vmatpush3.bf16.msra.mxu0 %v633_v33 }
 0x13e   :  { %v196_v25 = vpop.f32.mrb[0].mxu0 }
 0x13f   :  { %v558_v26 = vpop.f32.mrb[1].mxu0  ;;  %v197_v28 = vadd.f32 %v476_v24, %v196_v25 }
 0x140   :  { %v199_v27 = vpop.f32.mrb[2].mxu0 }
 0x141   :  { %v200_v29 = vadd.f32 %v476_v24, %v199_v27  ;;  %v559_v30 = vpop.f32.mrb[3].mxu0 }
 0x143   :  { %v203_v31 = vpack.c.bf16 %v200_v29, %v197_v28 }
 0x145   :  { %577 = vmatmul.mubr.bf16.vlgmr.msra.gmra.mrb[0].mxu1 %v203_v31 }
 0x218   :  { %v309_v35 = vpop.f32.mrb[0].mxu1 }
 0x219   :  { %v578_v36 = vpop.f32.mrb[1].mxu1  ;;  %v310_v38 = vadd.f32 %v486_v34, %v309_v35 }
 0x21a   :  { %v312_v37 = vpop.f32.mrb[2].mxu1 }
 0x21b   :  { %v313_v39 = vadd.f32 %v486_v34, %v312_v37  ;;  %v579_v40 = vpop.f32.mrb[3].mxu1 }
 0x21d   :  { %v316_v41 = vpack.c.bf16 %v313_v39, %v310_v38 }
 0x21f   :  { %597 = vmatmul.mubr.bf16.vlgmr.msra.gmra.mrb[4].mxu0 %v316_v41 }
 0x2f2   :  { %v422_v43 = vpop.f32.mrb[4].mxu0 }
 0x2f3   :  { %v423_v44 = vadd.f32 %v495_v42, %v422_v43  ;;  %v598_v45 = vpop.f32.mrb[5].mxu0 }
 0x2f4   :  { %v425_v46 = vpop.f32.mrb[6].mxu0 }
 0x2f5   :  { %429 = vmax.xlane.f32.xlu0 %v423_v44  ;;  %v599_v47 = vpop.f32.mrb[7].mxu0  ;;  %v426_v48 = vadd.f32 %v495_v42, %v425_v46 }
 0x2f9   :  { %431 = vmax.xlane.f32.xlu0 %v426_v48 }
 0x382   :  { %v430_v49 = vpop.xlane.xlu0 %429 }
 0x383   :  { %v433_v50 = vsub.f32 %v423_v44, %v430_v49 }
 0x385   :  { %v435_v51 = vmul.f32 1.442695, %v433_v50 }
 0x386   :  { %v432_v52 = vpop.xlane.xlu0 %431 }
 0x387   :  { %634 = vpow2.f32 %v435_v51  ;;  %v434_v53 = vsub.f32 %v426_v48, %v432_v52 }
 0x389   :  { %v437_v54 = vmul.f32 1.442695, %v434_v53 }
 0x38b   :  { %636 = vpow2.f32 %v437_v54 }
 0x391   :  { %v635_v55 = vpop.eup %634 }
 0x392   :  { %439 = vadd.xlane.f32.xlu1 %v635_v55 }
 0x395   :  { %v637_v56 = vpop.eup %636 }
 0x396   :  { %441 = vadd.xlane.f32.xlu1 %v637_v56 }
 0x41f   :  { %v440_v57 = vpop.xlane.xlu1 %439 }
 0x420   :  { %638 = vrcp.f32 %v440_v57 }
 0x423   :  { %v442_v58 = vpop.xlane.xlu1 %441 }
 0x424   :  { %640 = vrcp.f32 %v442_v58 }
 0x42a   :  { %v639_v59 = vpop.eup %638 }
 0x42b   :  { %v445_v61 = vmul.f32 %v639_v59, %v635_v55 }
 0x42e   :  { %v641_v60 = vpop.eup %640 }
 0x42f   :  { %v446_v62 = vmul.f32 %v641_v60, %v637_v56 }
 0x431   :  { %v511_v63 = vpack.c.bf16 %v446_v62, %v445_v61 }
 0x433   :  { %512 = vst [vmem:[#allocation10] sm:$0xff] %v511_v63  }
 0x434   :  { %741 = shalt.err (!%p738_p8)
}
 0x435   :  { %s742_s11 = scalar_lea.hbm %s944_s7, 128 }
 0x436   :  { %p743_p9 = scmp.ne.s32.totalorder %s944_s7, %s742_s11  ;;  %p746_p10 = scmp.lt.u32.totalorder %s742_s11, %s944_s7 }
 0x438   :  { %p748_p11 = pnand %p746_p10, %p743_p9 }
 0x43a   :  { %751 = shalt.err (!%p748_p11)
}
 0x43b   :  { %468 = dma.vmem_to_hbm [thread:$0]  %s463_s6, 128, %s944_s7, [#allocation4], %s762_s13, %s762_s13, %s763_s14  }
 0x43c   :  { %758 = dma.done.wait [#allocation4], 128  }
 0x43d   :  { %759 = vsyncadd [#allocation4], 4294967168 }
 0x43e   :  { %472 = vsyncpa [#allocation3], 1 }
 0x43f   :  { %473 = vsyncpa [#allocation6], 1 }
 0x440   :  { %474 = vsyncpa [#allocation9], 1 }
 0x441   :  { %475 = vsyncpa [#allocation4], 1 }

</bundles_post_ra>
